<compile_context>
chip_gen: v6e
topology: v6e:2x2x1
jax: 0.10.0
libtpu: 0.0.40
codegen_flags: <defaults>
</compile_context>

<pallas_src>
import functools
import math

import jax
import jax.numpy as jnp
from jax.experimental import pallas as pl
from jax.experimental.pallas import tpu as pltpu

_NEG_LOG_1E4 = -math.log(1e-4)   # -log(clamp floor) used by ReverseCrossEntropy


def _nce_rce_kernel(pred_ref, labels_ref, out_ref, *, alpha, beta, n_total,
                    tile_batch):
    i = pl.program_id(0)

    logits = pred_ref[...].astype(jnp.float32)               # (TB, C)
    labels = labels_ref[...]                                  # (TB, 1) int32
    tb, c = logits.shape

    # Row-validity mask for batch padding.
    row_idx = jax.lax.broadcasted_iota(jnp.int32, (tb, 1), 0) + i * tile_batch
    valid = (row_idx < n_total).astype(jnp.float32)           # (TB, 1)

    # Numerically-stable softmax statistics (reductions along the lane axis).
    m = jnp.max(logits, axis=1, keepdims=True)                # (TB, 1)
    shifted = logits - m                                       # (TB, C)
    ex = jnp.exp(shifted)                                      # (TB, C)
    sumexp = jnp.sum(ex, axis=1, keepdims=True)                # (TB, 1)
    log_sumexp = jnp.log(sumexp)                               # (TB, 1)
    inv_sumexp = pl.reciprocal(sumexp, approx=True)            # EUP slot

    # one_hot(labels, C) via iota compare.
    cls = jax.lax.broadcasted_iota(jnp.int32, (tb, c), 1)
    one_hot = (cls == labels).astype(jnp.float32)              # (TB, C)

    # Normalized Cross Entropy, without materializing logp:
    #   logp[label]       = shifted[label] - log_sumexp
    #   sum(logp, axis=1) = sum(shifted, axis=1) - C * log_sumexp
    shifted_true = jnp.sum(one_hot * shifted, axis=1, keepdims=True)
    sum_shifted = jnp.sum(shifted, axis=1, keepdims=True)
    logp_true = shifted_true - log_sumexp                      # (TB, 1)
    denom = log_sumexp * jnp.float32(c) - sum_shifted          # = -sum(logp) > 0
    nce_row = -logp_true * pl.reciprocal(denom, approx=True)   # (TB, 1)

    # Reverse Cross Entropy: log(clamp(one_hot, 1e-4, 1)) is 0 on the true
    # class and log(1e-4) elsewhere, so
    #   rce = -log(1e-4) * (sum(clip(p, 1e-7, 1)) - clip(p[label], 1e-7, 1))
    p_cl = jnp.clip(ex * inv_sumexp, 1e-7, 1.0)                # (TB, C)
    p_true = jnp.clip(jnp.exp(logp_true), 1e-7, 1.0)           # (TB, 1)
    rce_row = jnp.float32(_NEG_LOG_1E4) * (
        jnp.sum(p_cl, axis=1, keepdims=True) - p_true)         # (TB, 1)

    # Per-row combined contribution; the batch mean happens outside the kernel.
    out_ref[...] = valid * (alpha * nce_row + beta * rce_row)


def _pick_tile_batch(n, c, itemsize, vmem_budget_bytes, max_rows=1024):
    # Double-buffered pred stream dominates VMEM: ~2 * TB * C * itemsize.
    tb = vmem_budget_bytes // max(1, 2 * c * itemsize)
    tb = min(int(tb), max_rows)
    tb = min(tb, -(-n // 16) * 16)        # no bigger than the (padded) batch
    tb = max(16, (tb // 16) * 16)         # multiple of 16 (bf16 sublane packing)
    return int(tb)


def _vmem_limit_bytes(tile_batch, c, itemsize):
    c_lanes = -(-c // 128) * 128          # lane-padded class axis in VMEM
    pred_bytes = 2 * tile_batch * c_lanes * itemsize   # double-buffered
    lab_bytes = 2 * tile_batch * 128 * 4
    out_bytes = 2 * tile_batch * 128 * 4
    need = pred_bytes + lab_bytes + out_bytes + (2 << 20)
    # Keep well under v7x's 64 MiB physical VMEM; at least the default scope.
    return int(min(max(need, 16 << 20), 48 << 20))


def nce_and_rce(pred, labels, *, alpha, beta, num_classes, tile_batch=None,
                vmem_budget_bytes=24 << 20):
    n, c = pred.shape
    assert c == num_classes
    itemsize = jnp.dtype(pred.dtype).itemsize
    if tile_batch is None:
        tile_batch = _pick_tile_batch(n, c, itemsize, vmem_budget_bytes)
    assert tile_batch % 8 == 0

    n_tiles = -(-n // tile_batch)
    n_pad = n_tiles * tile_batch
    if n_pad != n:
        pred = jnp.pad(pred, ((0, n_pad - n), (0, 0)))
        labels = jnp.pad(labels, ((0, n_pad - n),))
    labels2d = labels.astype(jnp.int32).reshape(n_pad, 1)

    kernel = functools.partial(_nce_rce_kernel, alpha=float(alpha),
                               beta=float(beta), n_total=n,
                               tile_batch=tile_batch)

    cost = pl.CostEstimate(
        flops=int(10 * n_pad * c),
        transcendentals=int(n_pad * c + 4 * n_pad),
        bytes_accessed=int(n_pad * c * itemsize + 8 * n_pad),
    )

    per_row = pl.pallas_call(
        kernel,
        out_shape=jax.ShapeDtypeStruct((n_pad, 1), jnp.float32),
        grid_spec=pltpu.PrefetchScalarGridSpec(
            num_scalar_prefetch=0,
            grid=(n_tiles,),
            in_specs=[
                pl.BlockSpec((tile_batch, c), lambda i: (i, 0)),  # pred tile
                pl.BlockSpec((tile_batch, 1), lambda i: (i, 0)),  # labels tile
            ],
            out_specs=pl.BlockSpec((tile_batch, 1), lambda i: (i, 0)),
        ),
        compiler_params=pltpu.CompilerParams(
            dimension_semantics=("parallel",),
            vmem_limit_bytes=_vmem_limit_bytes(tile_batch, c, itemsize)),
        cost_estimate=cost,
    )(pred, labels2d)

    # Final pairwise reduction + mean: alpha*mean(nce) + beta*mean(rce).
    return jnp.sum(per_row) / jnp.float32(n)


def _reference(pred, labels, alpha, beta, num_classes):
    pred = pred.astype(jnp.float32)
    logp = jax.nn.log_softmax(pred, axis=1)
    one_hot = jax.nn.one_hot(labels, num_classes, dtype=jnp.float32)
    nce = -jnp.sum(one_hot * logp, axis=1) / (-jnp.sum(logp, axis=1))
    p = jnp.clip(jax.nn.softmax(pred, axis=1), 1e-7, 1.0)
    lab_cl = jnp.clip(one_hot, 1e-4, 1.0)
    rce = -jnp.sum(p * jnp.log(lab_cl), axis=1)
    return alpha * jnp.mean(nce) + beta * jnp.mean(rce)


if __name__ == "__main__":
    key = jax.random.PRNGKey(0)
    k1, k2, k3, k4 = jax.random.split(key, 4)

    # Case 1: small demo matching the module's typical use.
    num_classes = 10
    batch = 16
    alpha, beta = 1.0, 1.0
    pred = jax.random.normal(k1, (batch, num_classes), dtype=jnp.float32)
    labels = jax.random.randint(k2, (batch,), 0, num_classes, dtype=jnp.int32)
    loss = jax.block_until_ready(
        nce_and_rce(pred, labels, alpha=alpha, beta=beta,
                    num_classes=num_classes))
    ref = _reference(pred, labels, alpha, beta, num_classes)
    assert jnp.allclose(loss, ref, rtol=2e-3, atol=1e-4), (loss, ref)

    # Case 2: ragged batch (exercises padding mask) + multi-tile grid.
    num_classes2 = 7
    batch2 = 50
    alpha2, beta2 = 0.5, 2.0
    pred2 = jax.random.normal(k3, (batch2, num_classes2), dtype=jnp.float32)
    labels2 = jax.random.randint(k4, (batch2,), 0, num_classes2,
                                 dtype=jnp.int32)
    loss2 = jax.block_until_ready(
        nce_and_rce(pred2, labels2, alpha=alpha2, beta=beta2,
                    num_classes=num_classes2, tile_batch=16))
    ref2 = _reference(pred2, labels2, alpha2, beta2, num_classes2)
    assert jnp.allclose(loss2, ref2, rtol=2e-3, atol=1e-4), (loss2, ref2)

    print("KERNEL_OK")
</pallas_src>

<mosaic_0001>
module attributes {stable_mosaic.version = 11 : i64} {
  func.func @_nce_rce_kernel(%arg0: i32, %arg1: memref<16x10xf32, #tpu.memory_space<vmem>>, %arg2: memref<16x1xi32, #tpu.memory_space<vmem>>, %arg3: memref<16x1xf32, #tpu.memory_space<vmem>>) attributes {dimension_semantics = [#tpu.dimension_semantics<parallel>], iteration_bounds = array<i64: 1>, scalar_prefetch = 0 : i64, scratch_operands = 0 : i64, tpu.core_type = #tpu.core_type<tc>, window_params = [{transform_indices = @transform_0, window_bounds = array<i64: 16, 10>}, {transform_indices = @transform_1, window_bounds = array<i64: 16, 1>}, {transform_indices = @transform_2, window_bounds = array<i64: 16, 1>}]} {
    %c0 = arith.constant 0 : index
    %c0_0 = arith.constant 0 : index
    %0 = vector.load %arg1[%c0, %c0_0] : memref<16x10xf32, #tpu.memory_space<vmem>>, vector<16x10xf32>
    %c0_1 = arith.constant 0 : index
    %c0_2 = arith.constant 0 : index
    %1 = vector.load %arg2[%c0_1, %c0_2] : memref<16x1xi32, #tpu.memory_space<vmem>>, vector<16x1xi32>
    %2 = tpu.iota {dimensions = array<i32: 0>} : vector<16x1xi32>
    %c16_i32 = arith.constant 16 : i32
    %3 = arith.muli %arg0, %c16_i32 : i32
    %4 = vector.broadcast %3 : i32 to vector<16x1xi32>
    %5 = arith.addi %2, %4 : vector<16x1xi32>
    %c16_i32_3 = arith.constant 16 : i32
    %6 = vector.broadcast %c16_i32_3 : i32 to vector<16x1xi32>
    %7 = arith.cmpi slt, %5, %6 : vector<16x1xi32>
    %8 = arith.extui %7 : vector<16x1xi1> to vector<16x1xi32>
    %9 = arith.sitofp %8 : vector<16x1xi32> to vector<16x1xf32>
    %cst = arith.constant dense<0xFF800000> : vector<16xf32>
    %10 = vector.multi_reduction <maximumf>, %0, %cst [1] : vector<16x10xf32> to vector<16xf32>
    %11 = vector.shape_cast %10 : vector<16xf32> to vector<16x1xf32>
    %12 = vector.broadcast %11 : vector<16x1xf32> to vector<16x10xf32>
    %13 = arith.subf %0, %12 : vector<16x10xf32>
    %14 = math.exp %13 : vector<16x10xf32>
    %cst_4 = arith.constant dense<0.000000e+00> : vector<16xf32>
    %15 = vector.multi_reduction <add>, %14, %cst_4 [1] : vector<16x10xf32> to vector<16xf32>
    %16 = vector.shape_cast %15 : vector<16xf32> to vector<16x1xf32>
    %17 = math.log %16 : vector<16x1xf32>
    %18 = tpu.reciprocal %16 {approx = true} : vector<16x1xf32> -> vector<16x1xf32>
    %19 = tpu.iota {dimensions = array<i32: 1>} : vector<16x10xi32>
    %20 = vector.broadcast %1 : vector<16x1xi32> to vector<16x10xi32>
    %21 = arith.cmpi eq, %19, %20 : vector<16x10xi32>
    %22 = arith.extui %21 : vector<16x10xi1> to vector<16x10xi32>
    %23 = arith.sitofp %22 : vector<16x10xi32> to vector<16x10xf32>
    %24 = arith.mulf %23, %13 : vector<16x10xf32>
    %cst_5 = arith.constant dense<0.000000e+00> : vector<16xf32>
    %25 = vector.multi_reduction <add>, %24, %cst_5 [1] : vector<16x10xf32> to vector<16xf32>
    %26 = vector.shape_cast %25 : vector<16xf32> to vector<16x1xf32>
    %cst_6 = arith.constant dense<0.000000e+00> : vector<16xf32>
    %27 = vector.multi_reduction <add>, %13, %cst_6 [1] : vector<16x10xf32> to vector<16xf32>
    %28 = vector.shape_cast %27 : vector<16xf32> to vector<16x1xf32>
    %29 = arith.subf %26, %17 : vector<16x1xf32>
    %cst_7 = arith.constant 1.000000e+01 : f32
    %30 = vector.broadcast %cst_7 : f32 to vector<16x1xf32>
    %31 = arith.mulf %17, %30 : vector<16x1xf32>
    %32 = arith.subf %31, %28 : vector<16x1xf32>
    %cst_8 = arith.constant 0.000000e+00 : f32
    %33 = vector.broadcast %cst_8 : f32 to vector<16x1xf32>
    %34 = arith.subf %33, %29 : vector<16x1xf32>
    %35 = tpu.reciprocal %32 {approx = true} : vector<16x1xf32> -> vector<16x1xf32>
    %36 = arith.mulf %34, %35 : vector<16x1xf32>
    %37 = vector.broadcast %18 : vector<16x1xf32> to vector<16x10xf32>
    %38 = arith.mulf %14, %37 : vector<16x10xf32>
    %cst_9 = arith.constant 1.000000e-07 : f32
    %cst_10 = arith.constant 1.000000e+00 : f32
    %39 = vector.broadcast %cst_9 : f32 to vector<16x10xf32>
    %40 = arith.maximumf %39, %38 : vector<16x10xf32>
    %41 = vector.broadcast %cst_10 : f32 to vector<16x10xf32>
    %42 = arith.minimumf %41, %40 : vector<16x10xf32>
    %43 = math.exp %29 : vector<16x1xf32>
    %cst_11 = arith.constant 1.000000e-07 : f32
    %cst_12 = arith.constant 1.000000e+00 : f32
    %44 = vector.broadcast %cst_11 : f32 to vector<16x1xf32>
    %45 = arith.maximumf %44, %43 : vector<16x1xf32>
    %46 = vector.broadcast %cst_12 : f32 to vector<16x1xf32>
    %47 = arith.minimumf %46, %45 : vector<16x1xf32>
    %cst_13 = arith.constant dense<0.000000e+00> : vector<16xf32>
    %48 = vector.multi_reduction <add>, %42, %cst_13 [1] : vector<16x10xf32> to vector<16xf32>
    %49 = vector.shape_cast %48 : vector<16xf32> to vector<16x1xf32>
    %50 = arith.subf %49, %47 : vector<16x1xf32>
    %cst_14 = arith.constant 9.21034049 : f32
    %51 = vector.broadcast %cst_14 : f32 to vector<16x1xf32>
    %52 = arith.mulf %51, %50 : vector<16x1xf32>
    %cst_15 = arith.constant 1.000000e+00 : f32
    %53 = vector.broadcast %cst_15 : f32 to vector<16x1xf32>
    %54 = arith.mulf %53, %36 : vector<16x1xf32>
    %cst_16 = arith.constant 1.000000e+00 : f32
    %55 = vector.broadcast %cst_16 : f32 to vector<16x1xf32>
    %56 = arith.mulf %55, %52 : vector<16x1xf32>
    %57 = arith.addf %54, %56 : vector<16x1xf32>
    %58 = arith.mulf %9, %57 : vector<16x1xf32>
    %c0_17 = arith.constant 0 : index
    %c0_18 = arith.constant 0 : index
    %59 = vector.load %arg3[%c0_17, %c0_18] : memref<16x1xf32, #tpu.memory_space<vmem>>, vector<16x1xf32>
    tpu.vector_store %arg3[%c0_17, %c0_18], %58 {strides = array<i32>} : memref<16x1xf32, #tpu.memory_space<vmem>>, vector<16x1xf32>,
    return
  }
  func.func @transform_0(%arg0: i32) -> (i32, i32) {
    %c0_i32 = arith.constant 0 : i32
    %c0_i32_0 = arith.constant 0 : i32
    return %arg0, %c0_i32 : i32, i32
  }
  func.func @transform_1(%arg0: i32) -> (i32, i32) {
    %c0_i32 = arith.constant 0 : i32
    %c0_i32_0 = arith.constant 0 : i32
    return %arg0, %c0_i32 : i32, i32
  }
  func.func @transform_2(%arg0: i32) -> (i32, i32) {
    %c0_i32 = arith.constant 0 : i32
    %c0_i32_0 = arith.constant 0 : i32
    return %arg0, %c0_i32 : i32, i32
  }
}

</mosaic_0001>

<bundles_post_ra>
// kernel: tpu_custom_call.1
= control target key start
LH: loop header
LB: loop body
LE: loop exit
PB: predicated region body
PF: predicated region fallthrough
CT: control target
= control target key end

     0   :  { %vm28_vm0 = vcmask 80896   ;;  %v154_v2 = vmov 0   ;;  %v53_v17 = vlaneseq  ;;  %v155_v20 = vmov 0.0   ;;  %s199_s0 = inlined_call_operand.vmem [shape: f32[16,10], index: 0, kind: input, shape index: {}]   ;;  %s200_s1 = inlined_call_operand.vmem [shape: s32[16,1], index: 1, kind: input, shape index: {}]   ;;  %s201_s2 = inlined_call_operand.vmem [shape: f32[16,1], index: 2, kind: output, shape index: {}]  }
   0x1   :  { %v11_v0 = vld [vmem:[%s199_s0] sm:$0xff]  ;;  %v12_v1 = vld [vmem:[%s199_s0 + $0x8] sm:$0xff]  ;;  %132 = vset.pattern.permute.xlu0 %v154_v2  ;;  %133 = vset.pattern.permute.xlu1 %v154_v2  ;;  %vm121_vm3 = vcmask 7168  }
   0x2   :  { %v29_v3 = vsel %vm28_vm0, %v11_v0, -inf  ;;  %v32_v4 = vsel %vm28_vm0, %v12_v1, -inf  ;;  %v13_v5 = vld [vmem:[%s200_s1] sm:$0xff]  ;;  %v14_v16 = vld [vmem:[%s200_s1 + $0x8] sm:$0xff]  ;;  %v54_v18 = vand.u32 127, %v53_v17 }
   0x3   :  { %30 = vmax.xlane.f32.xlu0 %v29_v3 }
   0x7   :  { %33 = vmax.xlane.f32.xlu0 %v32_v4 }
  0x1d   :  { %56 = vperm.xlu0 %132, %v13_v5  }
  0x8c   :  { %v31_v6 = vpop.xlane.xlu0 %30 }
  0x8d   :  { %v35_v7 = vsub.f32 %v11_v0, %v31_v6 }
  0x8f   :  { %v37_v8 = vmul.f32 1.442695, %v35_v7  ;;  %v75_v24 = vsel %vm28_vm0, %v35_v7, 0.0 }
  0x90   :  { %v34_v9 = vpop.xlane.xlu0 %33 }
  0x91   :  { %134 = vpow2.f32 %v37_v8  ;;  %v36_v10 = vsub.f32 %v12_v1, %v34_v9 }
  0x93   :  { %v39_v11 = vmul.f32 1.442695, %v36_v10  ;;  %v78_v25 = vsel %vm28_vm0, %v36_v10, 0.0 }
  0x95   :  { %136 = vpow2.f32 %v39_v11 }
  0x98   :  { %v57_v19 = vpop.permute.xlu0 %56 }
  0x99   :  { %vm61_vm1 = vcmp.eq.s32.totalorder %v54_v18, %v57_v19 }
  0x9a   :  { %v128_v21 = vsel %vm61_vm1, 1.0, %v155_v20 }
  0x9b   :  { %v67_v22 = vmul.f32 %v128_v21, %v35_v7 }
  0x9d   :  { %v69_v23 = vsel %vm28_vm0, %v67_v22, 0.0 }
  0x9e   :  { %v135_v12 = vpop.eup %134 }
  0x9f   :  { %v41_v13 = vsel %vm28_vm0, %v135_v12, 0.0 }
  0xa0   :  { %42 = vadd.xlane.f32.xlu1 %v41_v13 }
  0xa2   :  { %v137_v14 = vpop.eup %136 }
  0xa3   :  { %v44_v15 = vsel %vm28_vm0, %v137_v14, 0.0 }
  0xa4   :  { %45 = vadd.xlane.f32.xlu1 %v44_v15 }
  0xb5   :  { %59 = vperm.xlu1 %133, %v14_v16  }
  0xd9   :  { %70 = vadd.xlane.f32.xlu1 %v69_v23 }
  0xdd   :  { %76 = vadd.xlane.f32.xlu1 %v75_v24 }
  0xe1   :  { %79 = vadd.xlane.f32.xlu1 %v78_v25 }
 0x129   :  { %v43_v26 = vpop.xlane.xlu1 %42 }
 0x12a   :  { %138 = vrcp.f32 %v43_v26 }
 0x12d   :  { %v46_v27 = vpop.xlane.xlu1 %45 }
 0x12e   :  { %140 = vrcp.f32 %v46_v27 }
 0x12f   :  { %142 = vlog2.f32 %v43_v26 }
 0x130   :  { %144 = vlog2.f32 %v46_v27 }
 0x131   :  { %v60_v28 = vpop.permute.xlu1 %59 }
 0x132   :  { %vm62_vm2 = vcmp.eq.s32.totalorder %v54_v18, %v60_v28 }
 0x133   :  { %v129_v29 = vsel %vm62_vm2, 1.0, %v155_v20 }
 0x134   :  { %v68_v30 = vmul.f32 %v129_v29, %v36_v10 }
 0x136   :  { %v72_v31 = vsel %vm28_vm0, %v68_v30, 0.0 }
 0x137   :  { %73 = vadd.xlane.f32.xlu0 %v72_v31  ;;  %v139_v32 = vpop.eup %138 }
 0x138   :  { %v93_v33 = vmul.f32 %v139_v32, %v135_v12 }
 0x13a   :  { %v95_v34 = vmax.f32 %v93_v33, 1e-07 }
 0x13b   :  { %v141_v35 = vpop.eup %140 }
 0x13c   :  { %v97_v36 = vmin.f32 %v95_v34, 1.0  ;;  %v94_v37 = vmul.f32 %v141_v35, %v137_v14  ;;  %v143_v42 = vpop.eup %142 }
 0x13d   :  { %v48_v44 = vmul.f32 0.6931472, %v143_v42  ;;  %v145_v50 = vpop.eup %144 }
 0x13e   :  { %v107_v38 = vsel %vm28_vm0, %v97_v36, 0.0  ;;  %v96_v39 = vmax.f32 %v94_v37, 1e-07  ;;  %v50_v51 = vmul.f32 0.6931472, %v145_v50 }
 0x13f   :  { %108 = vadd.xlane.f32.xlu1 %v107_v38  ;;  %v83_v48 = vmul.f32 10.0, %v48_v44 }
 0x140   :  { %v98_v40 = vmin.f32 %v96_v39, 1.0  ;;  %v84_v58 = vmul.f32 10.0, %v50_v51 }
 0x142   :  { %v110_v41 = vsel %vm28_vm0, %v98_v40, 0.0 }
 0x143   :  { %111 = vadd.xlane.f32.xlu1 %v110_v41 }
 0x162   :  { %v71_v43 = vpop.xlane.xlu1 %70 }
 0x163   :  { %v81_v45 = vsub.f32 %v71_v43, %v48_v44 }
 0x165   :  { %v99_v46 = vmul.f32 1.442695, %v81_v45  ;;  %v87_v63 = vsub.f32 0.0, %v81_v45 }
 0x166   :  { %v77_v47 = vpop.xlane.xlu1 %76 }
 0x167   :  { %146 = vpow2.f32 %v99_v46  ;;  %v85_v49 = vsub.f32 %v83_v48, %v77_v47 }
 0x169   :  { %148 = vrcp.f32 %v85_v49 }
 0x16a   :  { %v80_v56 = vpop.xlane.xlu1 %79 }
 0x16b   :  { %v86_v59 = vsub.f32 %v84_v58, %v80_v56 }
 0x174   :  { %v147_v53 = vpop.eup %146 }
 0x175   :  { %v103_v57 = vmax.f32 %v147_v53, 1e-07 }
 0x176   :  { %v149_v61 = vpop.eup %148 }
 0x177   :  { %v105_v60 = vmin.f32 %v103_v57, 1.0  ;;  %v91_v1 = vmul.f32 %v149_v61, %v87_v63 }
 0x1c0   :  { %v74_v52 = vpop.xlane.xlu0 %73 }
 0x1c1   :  { %v82_v54 = vsub.f32 %v74_v52, %v50_v51 }
 0x1c3   :  { %v101_v55 = vmul.f32 1.442695, %v82_v54  ;;  %v88_v6 = vsub.f32 0.0, %v82_v54 }
 0x1c5   :  { %150 = vpow2.f32 %v101_v55 }
 0x1c6   :  { %152 = vrcp.f32 %v86_v59 }
 0x1c8   :  { %v109_v62 = vpop.xlane.xlu1 %108 }
 0x1c9   :  { %v113_v0 = vsub.f32 %v109_v62, %v105_v60 }
 0x1cb   :  { %v115_v2 = vmul.f32 9.2103405, %v113_v0 }
 0x1cc   :  { %v112_v8 = vpop.xlane.xlu1 %111 }
 0x1cd   :  { %v117_v3 = vadd.f32 %v115_v2, %v91_v1 }
 0x1cf   :  { %122 = vst.msk [vmem:[%s201_s2] sm:$0xff] %vm121_vm3, %v117_v3 }
 0x1d2   :  { %v151_v4 = vpop.eup %150 }
 0x1d3   :  { %v104_v5 = vmax.f32 %v151_v4, 1e-07  ;;  %v153_v10 = vpop.eup %152 }
 0x1d4   :  { %v92_v11 = vmul.f32 %v153_v10, %v88_v6 }
 0x1d5   :  { %v106_v7 = vmin.f32 %v104_v5, 1.0 }
 0x1d7   :  { %v114_v9 = vsub.f32 %v112_v8, %v106_v7 }
 0x1d9   :  { %v116_v12 = vmul.f32 9.2103405, %v114_v9 }
 0x1db   :  { %v118_v13 = vadd.f32 %v116_v12, %v92_v11 }
 0x1dd   :  { %123 = vst.msk [vmem:[%s201_s2 + $0x8] sm:$0xff] %vm121_vm3, %v118_v13 }

</bundles_post_ra>
